<compile_context>
chip_gen: v6e
topology: v6e:2x2x1
jax: 0.10.0
libtpu: 0.0.40
codegen_flags: <defaults>
</compile_context>

<pallas_src>
import jax
import jax.numpy as jnp
from jax.experimental import pallas as pl
from jax.experimental.pallas import tpu as pltpu


def _glu_conv1d_kernel(x_ref, h_ref, w_ref, b_ref, o_ref):
    # x_ref: (TL, Cin)           current sequence tile (compute dtype)
    # h_ref: (HALO, Cin)         next HALO (= max(K-1,1)) padded rows (halo)
    # w_ref: (K*Cin, 2*Cout_p)   im2col weight, [value | gate] halves
    # b_ref: (1, 2*Cout_p)       f32 bias, same layout
    # o_ref: (TL, Cout_p)
    tl = x_ref.shape[0]
    cin = x_ref.shape[1]
    cout_p = o_ref.shape[1]
    k = w_ref.shape[0] // cin

    # Rows [0, TL+HALO) of the padded input covered by this tile.
    full = jnp.concatenate([x_ref[...], h_ref[...]], axis=0)        # (TL+HALO, Cin)

    # im2col: row i = [full[i], full[i+1], ..., full[i+K-1]]  -> one wide matmul.
    cols = jnp.concatenate([full[t:t + tl, :] for t in range(k)], axis=1)  # (TL, K*Cin)

    acc = jnp.dot(cols, w_ref[...], preferred_element_type=jnp.float32)    # (TL, 2*Cout_p)
    acc = acc + b_ref[...].astype(jnp.float32)

    # Lane-aligned split (Cout_p is a multiple of 128) -> no relayout, no masked stores.
    val = acc[:, :cout_p]
    gate = acc[:, cout_p:]
    o_ref[...] = (val * jax.nn.sigmoid(gate)).astype(o_ref.dtype)


def glu_forward(x_ncl, weight, bias, kernel_size, *, tl=256,
                compute_dtype=jnp.bfloat16):
    """x_ncl: (B, Cin, L); weight: (2*Cout, Cin, K) PyTorch layout; bias: (2*Cout,)."""
    B, Cin, L = x_ncl.shape
    two_cout = weight.shape[0]
    Cout = two_cout // 2
    K = int(kernel_size)
    pad = (K - 1) // 2
    # Matches nn.Conv1d output length (== L for odd K, L-1 for even K).
    L_out = L + 2 * pad - K + 1
    assert L_out > 0, "kernel_size too large for this sequence length"

    def rup(a, m):
        return (a + m - 1) // m * m

    # Sequence-tile size: multiple of 8 sublanes, no bigger than needed, and at
    # least K so the K-1 halo rows always live inside the single next tile.
    TL = max(8, min(rup(tl, 8), rup(L_out, 8)))
    TL = max(TL, rup(K, 8))
    NT = pl.cdiv(L_out, TL)
    HALO = max(K - 1, 1)

    Cout_p = rup(Cout, 128)          # lane-dense output channels

    # ---- layout glue: NCL -> NLC, conv left-pad, zero-pad right to (NT+1)*TL ----
    x_nlc = jnp.transpose(x_ncl, (0, 2, 1))                           # (B, L, Cin)
    total_rows = (NT + 1) * TL
    x_ext = jnp.pad(x_nlc, ((0, 0), (pad, total_rows - pad - L), (0, 0)))
    x_ext = x_ext.astype(compute_dtype)                               # (B, total_rows, Cin)

    # Halo rows for tile lt = first HALO rows of tile lt+1 (tiny gather in XLA).
    halo = x_ext.reshape(B, NT + 1, TL, Cin)[:, 1:, :HALO, :]         # (B, NT, HALO, Cin)
    halo = halo.reshape(B * NT, HALO, Cin)

    # ---- weights: (2*Cout, Cin, K) -> im2col (K*Cin, 2*Cout_p), halves padded to 128 lanes
    w_kio = jnp.transpose(weight, (2, 1, 0))                          # (K, Cin, 2*Cout)
    w_val = jnp.pad(w_kio[..., :Cout], ((0, 0), (0, 0), (0, Cout_p - Cout)))
    w_gate = jnp.pad(w_kio[..., Cout:], ((0, 0), (0, 0), (0, Cout_p - Cout)))
    w_flat = jnp.concatenate([w_val, w_gate], axis=-1)                # (K, Cin, 2*Cout_p)
    w_flat = w_flat.reshape(K * Cin, 2 * Cout_p).astype(compute_dtype)

    b_val = jnp.pad(bias[:Cout], (0, Cout_p - Cout))
    b_gate = jnp.pad(bias[Cout:], (0, Cout_p - Cout))
    b_flat = jnp.concatenate([b_val, b_gate]).reshape(1, 2 * Cout_p).astype(jnp.float32)

    out_p = pl.pallas_call(
        _glu_conv1d_kernel,
        out_shape=jax.ShapeDtypeStruct((B, NT * TL, Cout_p), x_ncl.dtype),
        grid_spec=pltpu.PrefetchScalarGridSpec(
            num_scalar_prefetch=0,
            grid=(B, NT),
            in_specs=[
                # current L tile (batch dim squeezed away)
                pl.BlockSpec((None, TL, Cin), lambda b, lt: (b, lt, 0)),
                # halo rows for this (b, lt) tile
                pl.BlockSpec((None, HALO, Cin), lambda b, lt: (b * NT + lt, 0, 0)),
                # im2col weight + bias, resident across the grid
                pl.BlockSpec((K * Cin, 2 * Cout_p), lambda b, lt: (0, 0)),
                pl.BlockSpec((1, 2 * Cout_p), lambda b, lt: (0, 0)),
            ],
            out_specs=pl.BlockSpec((None, TL, Cout_p), lambda b, lt: (b, lt, 0)),
        ),
        compiler_params=pltpu.CompilerParams(
            dimension_semantics=("parallel", "parallel"),
        ),
    )(x_ext, halo, w_flat, b_flat)

    out = out_p[:, :L_out, :Cout]                                     # drop L / Cout padding
    return jnp.transpose(out, (0, 2, 1)).astype(x_ncl.dtype)          # (B, Cout, L_out)


def _reference(x_ncl, weight, bias, kernel_size):
    """Pure-JAX reference mirroring nn.Conv1d + GLU (f32)."""
    pad = (kernel_size - 1) // 2
    out = jax.lax.conv_general_dilated(
        x_ncl.astype(jnp.float32),
        weight.astype(jnp.float32),
        window_strides=(1,),
        padding=[(pad, pad)],
        dimension_numbers=("NCH", "OIH", "NCH"),
    ) + bias.astype(jnp.float32)[None, :, None]
    cout = out.shape[1] // 2
    out1, out2 = out[:, :cout], out[:, cout:]
    return (out1 * jax.nn.sigmoid(out2)).astype(x_ncl.dtype)


if __name__ == "__main__":
    B, Cin, Cout, K, L = 2, 4, 6, 3, 16

    key = jax.random.PRNGKey(0)
    kx, kw, kb = jax.random.split(key, 3)

    x = jax.random.normal(kx, (B, Cin, L), dtype=jnp.float32)
    fan_in = Cin * K
    bound = 1.0 / (fan_in ** 0.5)
    weight = jax.random.uniform(kw, (2 * Cout, Cin, K), jnp.float32, -bound, bound)
    bias = jax.random.uniform(kb, (2 * Cout,), jnp.float32, -bound, bound)

    y_ref = _reference(x, weight, bias, K)

    # f32 matmul path: exact check against the reference.
    y32 = jax.block_until_ready(glu_forward(x, weight, bias, K, compute_dtype=jnp.float32))
    assert y32.shape == (B, Cout, L), y32.shape
    assert jnp.allclose(y32, y_ref, atol=1e-5, rtol=1e-5), float(jnp.max(jnp.abs(y32 - y_ref)))

    # default bf16 matmul path (MXU-friendly): looser tolerance.
    ybf = jax.block_until_ready(glu_forward(x, weight, bias, K))
    assert ybf.shape == (B, Cout, L), ybf.shape
    assert jnp.allclose(ybf, y_ref, atol=5e-2, rtol=5e-2), float(jnp.max(jnp.abs(ybf - y_ref)))

    # Multi-tile path (small TL forces NT > 1) exercises the halo logic.
    y_tiled = jax.block_until_ready(
        glu_forward(x, weight, bias, K, tl=8, compute_dtype=jnp.float32))
    assert jnp.allclose(y_tiled, y_ref, atol=1e-5, rtol=1e-5), \
        float(jnp.max(jnp.abs(y_tiled - y_ref)))

    print("KERNEL_OK")
</pallas_src>

<mosaic_0001>
module attributes {stable_mosaic.version = 11 : i64} {
  func.func @_glu_conv1d_kernel(%arg0: i32, %arg1: i32, %arg2: memref<1x16x4xf32, #tpu.memory_space<vmem>>, %arg3: memref<1x2x4xf32, #tpu.memory_space<vmem>>, %arg4: memref<12x256xf32, #tpu.memory_space<vmem>>, %arg5: memref<1x256xf32, #tpu.memory_space<vmem>>, %arg6: memref<1x16x128xf32, #tpu.memory_space<vmem>>) attributes {dimension_semantics = [#tpu.dimension_semantics<parallel>, #tpu.dimension_semantics<parallel>], iteration_bounds = array<i64: 2, 1>, scalar_prefetch = 0 : i64, scratch_operands = 0 : i64, tpu.core_type = #tpu.core_type<tc>, window_params = [{transform_indices = @transform_0, window_bounds = array<i64: 1, 16, 4>}, {transform_indices = @transform_1, window_bounds = array<i64: 1, 2, 4>}, {pipeline_mode = #tpu.pipeline_mode<synchronous>, transform_indices = @transform_2, window_bounds = array<i64: 12, 256>}, {pipeline_mode = #tpu.pipeline_mode<synchronous>, transform_indices = @transform_3, window_bounds = array<i64: 1, 256>}, {transform_indices = @transform_4, window_bounds = array<i64: 1, 16, 128>}]} {
    %c0 = arith.constant 0 : index
    %c0_0 = arith.constant 0 : index
    %c0_1 = arith.constant 0 : index
    %0 = vector.load %arg2[%c0, %c0_0, %c0_1] : memref<1x16x4xf32, #tpu.memory_space<vmem>>, vector<1x16x4xf32>
    %1 = vector.shape_cast %0 : vector<1x16x4xf32> to vector<16x4xf32>
    %c0_2 = arith.constant 0 : index
    %c0_3 = arith.constant 0 : index
    %c0_4 = arith.constant 0 : index
    %2 = vector.load %arg3[%c0_2, %c0_3, %c0_4] : memref<1x2x4xf32, #tpu.memory_space<vmem>>, vector<1x2x4xf32>
    %3 = vector.shape_cast %2 : vector<1x2x4xf32> to vector<2x4xf32>
    %4 = tpu.concatenate %1, %3 in 0 : vector<16x4xf32>, vector<2x4xf32> -> vector<18x4xf32>
    %5 = vector.extract_strided_slice %4 {offsets = [0, 0], sizes = [16, 4], strides = [1, 1]} : vector<18x4xf32> to vector<16x4xf32>
    %6 = vector.extract_strided_slice %4 {offsets = [1, 0], sizes = [16, 4], strides = [1, 1]} : vector<18x4xf32> to vector<16x4xf32>
    %7 = vector.extract_strided_slice %4 {offsets = [2, 0], sizes = [16, 4], strides = [1, 1]} : vector<18x4xf32> to vector<16x4xf32>
    %8 = tpu.concatenate %5, %6, %7 in 1 : vector<16x4xf32>, vector<16x4xf32>, vector<16x4xf32> -> vector<16x12xf32>
    %c0_5 = arith.constant 0 : index
    %c0_6 = arith.constant 0 : index
    %9 = vector.load %arg4[%c0_5, %c0_6] : memref<12x256xf32, #tpu.memory_space<vmem>>, vector<12x256xf32>
    %cst = arith.constant dense<0.000000e+00> : vector<16x256xf32>
    %10 = tpu.matmul %8, %9, %cst {dimension_numbers = #tpu.dot_dimension_numbers<[1], [0], [0], [1], [0, 0, 1, 1], [], []>} : vector<16x12xf32>, vector<12x256xf32>, vector<16x256xf32> -> vector<16x256xf32>
    %c0_7 = arith.constant 0 : index
    %c0_8 = arith.constant 0 : index
    %11 = vector.load %arg5[%c0_7, %c0_8] : memref<1x256xf32, #tpu.memory_space<vmem>>, vector<1x256xf32>
    %12 = vector.broadcast %11 : vector<1x256xf32> to vector<16x256xf32>
    %13 = arith.addf %10, %12 : vector<16x256xf32>
    %14 = vector.extract_strided_slice %13 {offsets = [0, 0], sizes = [16, 128], strides = [1, 1]} : vector<16x256xf32> to vector<16x128xf32>
    %15 = vector.extract_strided_slice %13 {offsets = [0, 128], sizes = [16, 128], strides = [1, 1]} : vector<16x256xf32> to vector<16x128xf32>
    %16 = arith.negf %15 : vector<16x128xf32>
    %17 = math.exp %16 : vector<16x128xf32>
    %cst_9 = arith.constant 1.000000e+00 : f32
    %18 = vector.broadcast %cst_9 : f32 to vector<16x128xf32>
    %19 = arith.addf %18, %17 : vector<16x128xf32>
    %20 = arith.divf %18, %19 : vector<16x128xf32>
    %21 = arith.mulf %14, %20 : vector<16x128xf32>
    %c0_10 = arith.constant 0 : index
    %c0_11 = arith.constant 0 : index
    %c0_12 = arith.constant 0 : index
    %22 = vector.load %arg6[%c0_10, %c0_11, %c0_12] : memref<1x16x128xf32, #tpu.memory_space<vmem>>, vector<1x16x128xf32>
    %23 = vector.shape_cast %22 : vector<1x16x128xf32> to vector<16x128xf32>
    %24 = vector.shape_cast %21 : vector<16x128xf32> to vector<1x16x128xf32>
    tpu.vector_store %arg6[%c0_10, %c0_11, %c0_12], %24 {strides = array<i32>} : memref<1x16x128xf32, #tpu.memory_space<vmem>>, vector<1x16x128xf32>,
    return
  }
  func.func @transform_0(%arg0: i32, %arg1: i32) -> (i32, i32, i32) {
    %c0_i32 = arith.constant 0 : i32
    %c0_i32_0 = arith.constant 0 : i32
    return %arg0, %arg1, %c0_i32 : i32, i32, i32
  }
  func.func @transform_1(%arg0: i32, %arg1: i32) -> (i32, i32, i32) {
    %c1_i32 = arith.constant 1 : i32
    %0 = arith.muli %arg0, %c1_i32 : i32
    %1 = arith.addi %0, %arg1 : i32
    %c0_i32 = arith.constant 0 : i32
    %c0_i32_0 = arith.constant 0 : i32
    %c0_i32_1 = arith.constant 0 : i32
    return %1, %c0_i32, %c0_i32_0 : i32, i32, i32
  }
  func.func @transform_2(%arg0: i32, %arg1: i32) -> (i32, i32) {
    %c0_i32 = arith.constant 0 : i32
    %c0_i32_0 = arith.constant 0 : i32
    %c0_i32_1 = arith.constant 0 : i32
    return %c0_i32, %c0_i32_0 : i32, i32
  }
  func.func @transform_3(%arg0: i32, %arg1: i32) -> (i32, i32) {
    %c0_i32 = arith.constant 0 : i32
    %c0_i32_0 = arith.constant 0 : i32
    %c0_i32_1 = arith.constant 0 : i32
    return %c0_i32, %c0_i32_0 : i32, i32
  }
  func.func @transform_4(%arg0: i32, %arg1: i32) -> (i32, i32, i32) {
    %c0_i32 = arith.constant 0 : i32
    %c0_i32_0 = arith.constant 0 : i32
    return %arg0, %arg1, %c0_i32 : i32, i32, i32
  }
}

</mosaic_0001>

<bundles_post_ra>
// kernel: tpu_custom_call.1
= control target key start
LH: loop header
LB: loop body
LE: loop exit
PB: predicated region body
PF: predicated region fallthrough
CT: control target
= control target key end

     0   :  { %9 = vsyncpa [#allocation3], 0  ;;  %s857_s0 = inlined_call_operand.vmem [shape: f32[2,32,4], index: 0, kind: input, shape index: {}]   ;;  %s858_s1 = inlined_call_operand.vmem [shape: f32[2,2,4], index: 1, kind: input, shape index: {}]   ;;  %s859_s2 = inlined_call_operand.vmem [shape: f32[12,256], index: 2, kind: input, shape index: {}]   ;;  %s860_s3 = inlined_call_operand.vmem [shape: f32[1,256], index: 3, kind: input, shape index: {}]   ;;  %s861_s4 = inlined_call_operand.hbm [shape: f32[2,16,128], index: 4, kind: output, shape index: {}]  }
   0x1   :  { %11 = vsyncpa [#allocation3 + $0x1], 0  ;;  %s718_s15 = smov 0   ;;  %s720_s16 = smov 0  }
   0x2   :  { %s722_s17 = smov 0   ;;  %s724_s18 = smov 0  }
   0x3   :  { %s726_s19 = smov 0   ;;  %s728_s20 = smov 0  }
   0x4 LB: > { %s517_s21 = sadd.s32 4294967295, %s686_s20   ;;  %s518_s22 = sadd.s32 4294967294, %s686_s20   ;;  %s686_s20 = sphi %s728_s20, %s17_s20   ;;  %s682_s19 = sphi %s726_s19, %s868_s19   ;;  %s678_s18 = sphi %s724_s18, %s867_s18   ;;  %s674_s17 = sphi %s722_s17, %s866_s17   ;;  %s670_s16 = sphi %s720_s16, %s865_s16   ;;  %s666_s15 = sphi %s718_s15, %s864_s15  }
   0x5   : > { %s29_s23 = sadd.s32 1, %s682_s19  ;;  %s136_s24 = sadd.s32 1, %s674_s17 }
   0x6   : > { %p31_p0 = scmp.ge.s32.totalorder %s29_s23, 2  ;;  %p146_p1 = scmp.ne.s32.totalorder %s674_s17, %s670_s16 }
   0x7   : > { %p147_p2 = scmp.eq.s32.totalorder %s517_s21, 1  ;;  %p152_p3 = scmp.ne.s32.totalorder %s670_s16, %s666_s15 }
   0x8   : > { %s870_s23 = smov (%p31_p0, %s29_s23), 0  ;;  %p153_p5 = scmp.eq.s32.totalorder %s518_s22, 1 }
   0x9   : > { %p758_p4 = por %p147_p2, %p146_p1  ;;  %s131_s26 = ssub.s32 %s682_s19, %s870_s23 }
   0xa   : > { %p521_p6 = scmp.ge.s32.totalorder %s686_s20, 1  ;;  %p134_p7 = scmp.eq.s32.totalorder %s131_s26, 0 }
   0xb   : > { %p765_p8 = por %p153_p5, %p152_p3  ;;  %p199_p9 = scmp.lt.s32.totalorder %s686_s20, 3 }
   0xc   : > { %s771_s28 = scalar_select %p134_p7, %s674_s17, %s136_s24  }
   0xd   : > { %p200_p10 = pnand %p521_p6, %p199_p9 }
   0xe   : > { %p235_p11 = scmp.lt.s32.totalorder (!%p200_p10), %s678_s18, 1  ;;  %s689_s30 = smov (!%p200_p10), 4  }
   0xf   : > { %203 = sbr.rel (%p200_p10) target bundleno = 395 (0x18b), region = 36  ;;  %s690_s5 = smov (!%p200_p10), 8  }
  0x10   : > { %s231_s8 = sand.u32 (!%p200_p10), 1, %s670_s16   ;;  %s538_s10 = sshll.u32 (!%p200_p10), %s678_s18, 8 }
  0x11   : > { %s807_s21 = scalar_lea.hbm (!%p200_p10), %s861_s4, %s538_s10  ;;  %s691_s24 = smov (!%p200_p10), [#allocation2]  }
  0x12   : > { %s614_s26 = sshll.u32 (!%p200_p10), %s691_s24, 4  ;;  %s615_s26 = int_to_ptr.vmem [resolvable:$false] %s614_s26 }
  0x14   : > { %v290_v0 = vld [vmem:[%s859_s2 + $0x18] sm:$0xf]  ;;  %vm310_vm0 = vcmask 1043456   ;;  %v289_v1 = vld [vmem:[%s859_s2 + $0x10] sm:$0xf]  ;;  %v288_v2 = vld [vmem:[%s859_s2 + $0x8] sm:$0xff]  ;;  %v293_v26 = vlaneseq }
  0x15   : > { %s236_s9 = scalar_select %p235_p11, %s678_s18, 1  ;;  %526 = vmatprep.subr.msk.mxu0 %vm310_vm0, %v290_v0  ;;  %v287_v3 = vld [vmem:[%s859_s2] sm:$0xff]  ;;  %539 = vmatprep.subr.msk.mxu1 %vm310_vm0, %v290_v0  ;;  %v688_v4 = vmov 0.0   ;;  %vm257_vm1 = vcmask 1046528   ;;  %vm269_vm2 = vcmask 1045504   ;;  %vm281_vm3 = vcmask 31744  }
  0x16   : > { %527 = vmatpush1.msk.msra.mxu0 %vm310_vm0, %v289_v1  ;;  %381 = vmatprep.mubr.f32.mxu0 %v688_v4  ;;  %vm284_vm4 = vcmask 64512   ;;  %vm303_vm5 = vcmask 97280   ;;  %v294_v27 = vshrl.u32 %v293_v26, 7  ;;  %v291_v29 = vld [vmem:[%s860_s3] sm:$0x3] }
  0x17   : > { %s537_s12 = sshll.u32 %s236_s9, 5  ;;  %s525_s13 = sshll.u32 %s236_s9, 1  ;;  %347 = vmatprep.subr.mxu0 %v288_v2  ;;  %541 = vmatpush1.msk.msra.mxu1 %vm310_vm0, %v289_v1 }
  0x18   : > { %s242_s22 = scalar_lea.vmem %s857_s0, %s537_s12  ;;  %s248_s29 = scalar_lea.vmem %s858_s1, %s525_s13  ;;  %348 = vmatpush1.msra.mxu0 %v287_v3  ;;  %540 = vmatprep.subr.mxu1 %v288_v2  ;;  %v299_v28 = vsub.s32 1, %v294_v27  ;;  %v295_v43 = vsub.s32 0, %v294_v27 }
  0x19   : > { %v251_v5 = vld [vmem:[%s242_s22] sm:$0xff]  ;;  %v252_v6 = vld [vmem:[%s242_s22 + $0x8] sm:$0xff]  ;;  %542 = vmatpush1.msra.mxu1 %v287_v3  ;;  %387 = vmatprep.mubr.f32.mxu1 %v688_v4  ;;  %s522_s9 = sshll.u32 %s231_s8, 4  ;;  %s811_s22 = scalar_lea.sflag [#allocation3], %s231_s8 }
  0x1a   : > { %v253_v7 = vld [vmem:[%s248_s29] sm:$0x3]  ;;  %v258_v8 = vrot.slane %v251_v5, 1  ;;  %v259_v9 = vrot.slane %v252_v6, 1  ;;  %v270_v10 = vrot.slane %v251_v5, 2  ;;  %v271_v11 = vrot.slane %v252_v6, 2 }
  0x1b   : > { %v261_v12 = vrot.slane %v253_v7, 1  ;;  %v273_v13 = vrot.slane %v253_v7, 2  ;;  %v300_v30 = vrot.slane %v291_v29, %v299_v28  ;;  %v296_v44 = vrot.slane %v291_v29, %v295_v43  ;;  %s233_s11 = scalar_lea.vmem [#allocation2], %s522_s9  ;;  %s616_s29 = scalar_lea.vmem %s615_s26, 512 }
  0x1c   : > { %v260_v14 = vsel %vm257_vm1, %v258_v8, %v259_v9  ;;  %v272_v15 = vsel %vm269_vm2, %v270_v10, %v271_v11  ;;  %s426_s12 = sshll.u32 %s233_s11, 4  ;;  %s809_s12 = int_to_ptr.vmem [resolvable:$true] %s426_s12 }
  0x1d   : > { %263 = vrot.lane.b32.xlu0 %v260_v14, %s689_s30  ;;  %275 = vrot.lane.b32.xlu1 %v272_v15, %s690_s5  ;;  %v262_v16 = vsel %vm257_vm1, %v259_v9, %v261_v12  ;;  %v274_v17 = vsel %vm269_vm2, %v271_v11, %v273_v13  ;;  %s610_s18 = scalar_lea.vmem %s809_s12, 256  ;;  %p617_p1 = scmp.lt.s32.totalorder %s809_s12, %s615_s26 }
  0x1e   : > { %p611_p12 = scmp.ne.s32.totalorder %s809_s12, %s610_s18  ;;  %p618_p2 = scmp.lt.s32.totalorder %s616_s29, %s610_s18 }
  0x20   : > { %p612_p13 = pnand %p611_p12, %p758_p4  ;;  %p619_p3 = por %p618_p2, %p617_p1 }
  0x21   : > { %265 = vrot.lane.b32.xlu0 %v262_v16, %s689_s30  ;;  %277 = vrot.lane.b32.xlu1 %v274_v17, %s690_s5 }
  0x22   : > { %p613_p0 = pneg %p612_p13 }
  0x24   : > { %p620_p5 = pnand %p619_p3, %p613_p0 }
  0x8f   : > { %v264_v18 = vpop.permute.xlu0 %263  ;;  %v276_v19 = vpop.permute.xlu1 %275 }
  0x90   : > { %v282_v20 = vsel %vm281_vm3, %v251_v5, %v264_v18 }
  0x91   : > { %v285_v21 = vsel %vm284_vm4, %v282_v20, %v276_v19 }
  0x92   : > { %528 = vmatmul.mubr.msk.f32.vlgmr.msra.gmra.mxu0 %vm303_vm5, %v285_v21 }
  0x93   : > { %v266_v22 = vpop.permute.xlu0 %265  ;;  %v278_v23 = vpop.permute.xlu1 %277 }
  0x94   : > { %v283_v24 = vsel %vm281_vm3, %v252_v6, %v266_v22 }
  0x95   : > { %v286_v25 = vsel %vm284_vm4, %v283_v24, %v278_v23 }
  0x96   : > { %529 = vmatmul.mubr.msk.f32.vlgmr.msra.gmra.mxu1 %vm303_vm5, %v286_v25 }
 0x152   : > { %v383_v31 = vpop.f32.mrf.mxu0 }
 0x153   : > { %v384_v45 = vadd.f32 %v383_v31, %v296_v44 }
 0x154   : > { %v385_v32 = vpop.f32.mrf.mxu0 }
 0x155   : > { %v386_v33 = vadd.f32 %v385_v32, %v300_v30 }
 0x156   : > { %v389_v34 = vpop.f32.mrf.mxu1 }
 0x157   : > { %v530_v35 = vmul.f32 -1.442695, %v386_v33  ;;  %v390_v48 = vadd.f32 %v389_v34, %v296_v44 }
 0x158   : > { %v391_v36 = vpop.f32.mrf.mxu1 }
 0x159   : > { %602 = vpow2.f32 %v530_v35  ;;  %v392_v37 = vadd.f32 %v391_v36, %v300_v30 }
 0x15b   : > { %v531_v38 = vmul.f32 -1.442695, %v392_v37 }
 0x15d   : > { %604 = vpow2.f32 %v531_v38 }
 0x166   : > { %v603_v39 = vpop.eup %602 }
 0x167   : > { %v400_v40 = vadd.f32 1.0, %v603_v39 }
 0x169   : > { %606 = vrcp.f32 %v400_v40 }
 0x16a   : > { %v605_v41 = vpop.eup %604 }
 0x16b   : > { %v401_v42 = vadd.f32 1.0, %v605_v41 }
 0x16d   : > { %608 = vrcp.f32 %v401_v42 }
 0x176   : > { %v607_v46 = vpop.eup %606 }
 0x177   : > { %v406_v47 = vmul.f32 %v607_v46, %v384_v45 }
 0x179   : > { %408 = vst [vmem:[%s233_s11] sm:$0xff] %v406_v47 }
 0x17a   : > { %v609_v49 = vpop.eup %608 }
 0x17b   : > { %v407_v50 = vmul.f32 %v609_v49, %v390_v48 }
 0x17d   : > { %409 = vst [vmem:[%s233_s11 + $0x8] sm:$0xff] %v407_v50 }
 0x17e   : > { %623 = shalt.err (!%p620_p5)
}
 0x17f   : > { %s624_s30 = scalar_lea.hbm %s807_s21, 256  ;;  %s628_s8 = scalar_lea.hbm %s861_s4, 512 }
 0x180   : > { %p625_p6 = scmp.ne.s32.totalorder %s807_s21, %s624_s30  ;;  %p629_p10 = scmp.lt.s32.totalorder %s807_s21, %s861_s4 }
 0x181   : > { %p630_p11 = scmp.lt.s32.totalorder %s628_s8, %s624_s30 }
 0x182   : > { %p626_p7 = pnand %p625_p6, %p758_p4 }
 0x183   : > { %p631_p12 = por %p630_p11, %p629_p10 }
 0x184   : > { %p627_p9 = pneg %p626_p7 }
 0x186   : > { %p632_p13 = pnand %p631_p12, %p627_p9 }
 0x188   : > { %635 = shalt.err (!%p632_p13)
}
 0x189   : > { %s692_s11 = smov 128  }
 0x18a   : > { %543 = dma.vmem_to_hbm [thread:$0]  (%p758_p4), %s809_s12, 256, %s807_s21, %s811_s22, %s692_s11, %s692_s11, %s690_s5  }
 0x18b PF: > { %p549_p0 = scmp.ge.s32.totalorder %s686_s20, 2  ;;  %s441_s13 = sand.u32 1, %s666_s15  }
 0x18c   : > { %s442_s14 = scalar_lea.sflag [#allocation3], %s441_s13 }
 0x18d   : > { %p546_p1 = pnand %p549_p0, %p765_p8 }
 0x18f   : > { %p547_p2 = pneg %p546_p1 }
 0x191   : > { %661 = dma.done.wait (%p547_p2), %s442_s14, 256  }
 0x192   : > { %663 = vsyncadd (%p547_p2), %s442_s14, 4294967040  ;;  %s17_s20 = sadd.s32 1, %s686_s20   ;;  %s864_s15 = smov %s670_s16 }
 0x193   : > { %p14_p3 = scmp.ge.s32.totalorder %s17_s20, 4   ;;  %s865_s16 = smov %s674_s17 }
 0x194   : > { %s866_s17 = smov %s771_s28  ;;  %s867_s18 = smov %s682_s19 }
 0x195   : > { %s868_s19 = smov %s870_s23  ;;  %16 = sbr.rel (!%p14_p3) target bundleno = 4 (0x4), region = 74 }
 0x19a   :  { %447 = vsyncpa [#allocation3], 1 }
 0x19b   :  { %449 = vsyncpa [#allocation3 + $0x1], 1 }

</bundles_post_ra>
